<compile_context>
chip_gen: v5e
topology: v5e:2x2
jax: 0.10.0
libtpu: 0.0.40
codegen_flags: <defaults>
</compile_context>

<pallas_src>
import jax
import jax.numpy as jnp
from jax.experimental import pallas as pl
from jax.experimental.pallas import tpu as pltpu


def _unembed_kernel(x_ref, o_ref):
    # x_ref: (tHW, C) VMEM tile ; o_ref: (C, tHW) VMEM tile.
    # TODO(synk): if the XLU ever becomes the binding slot (it shouldn't -- the
    # kernel is HBM-bound), try pltpu.einshape for a lane-layout-aware permute.
    o_ref[...] = x_ref[...].T


def _round_up(x, m):
    return (x + m - 1) // m * m


def _vmem_buffer_budget_bytes():
    """Padded double-buffer budget, derived from the chip's VMEM capacity."""
    try:
        cap = int(pltpu.get_tpu_info().vmem_capacity_bytes)
    except Exception:  # interpret mode / older runtimes: assume smallest (v7x)
        cap = 64 << 20
    # Stay well under the scoped limit we request below (32 MiB) and under
    # physical VMEM on v7x (64 MiB per TensorCore).
    return min(cap // 4, 12 << 20)


def _pick_thw(B, HW, C, itemsize):
    """Largest lane-dense (multiple-of-128) HW tile that
       (a) fits a padding-aware, double-buffered VMEM budget, and
       (b) leaves >= ~8 total grid steps for pipelining / 2-TC sharding."""
    if HW < 128:
        # Full-extent block (exempt from the (8,128) divisibility rule).
        return HW

    budget = _vmem_buffer_budget_bytes()
    c_in_padded = _round_up(C, 128)  # input tile: C is the lane (last) dim
    c_out_padded = _round_up(C, 8)   # output tile: C is the sublane dim

    def footprint(thw):
        # 2x input buffers + 2x output buffers (auto double-buffering).
        return 2 * thw * (c_in_padded + c_out_padded) * itemsize

    # Keep >= ~8 total grid steps (>= 4 per v7x TensorCore) when HW allows it.
    min_steps_per_batch = max(1, pl.cdiv(8, B))
    thw_cap = _round_up(pl.cdiv(HW, min_steps_per_batch), 128)

    thw = 128  # minimum lane-dense tile; always legal here since HW >= 128
    for cand in (4096, 2048, 1024, 512, 256, 128):
        if cand <= thw_cap and cand <= HW and footprint(cand) <= budget:
            thw = cand
            break
    return thw


def patch_unembed(x, x_size, embed_dim):
    """x: (B, HW, C) array, x_size: (H, W) python ints. Returns (B, C, H, W)."""
    B, HW, C = x.shape
    H, W = int(x_size[0]), int(x_size[1])
    assert C == embed_dim, f"channel mismatch: {C} vs embed_dim={embed_dim}"
    assert HW == H * W, f"token count mismatch: {HW} vs {H}*{W}"

    itemsize = jnp.dtype(x.dtype).itemsize
    tHW = _pick_thw(B, HW, C, itemsize)
    n_hw = pl.cdiv(HW, tHW)  # ragged last block (if any) is masked by Pallas

    cost = pl.CostEstimate(
        flops=0,
        transcendentals=0,
        bytes_accessed=2 * B * HW * C * itemsize,  # read + write every byte once
    )

    out_chw = pl.pallas_call(
        _unembed_kernel,
        out_shape=jax.ShapeDtypeStruct((B, C, HW), x.dtype),
        grid_spec=pltpu.PrefetchScalarGridSpec(
            num_scalar_prefetch=0,
            grid=(B, n_hw),
            in_specs=[pl.BlockSpec((pl.Squeezed(), tHW, C),
                                   lambda b, h: (b, h, 0))],
            # NOTE: candidate sweep -- pipeline_mode=pl.Buffered(3) here could
            # hide the strided (C-descriptor) output writeback; keep default
            # double-buffering unless it measures > 5 sigma.
            out_specs=pl.BlockSpec((pl.Squeezed(), C, tHW),
                                   lambda b, h: (b, 0, h)),
        ),
        compiler_params=pltpu.CompilerParams(
            dimension_semantics=("parallel", "parallel"),
            vmem_limit_bytes=32 << 20,
        ),
        cost_estimate=cost,
    )(x)

    # Row-major view, same as torch .view(B, C, H, W)
    return out_chw.reshape(B, C, H, W)


if __name__ == "__main__":
    # Small shapes consistent with the module: B=2, embed_dim=32, H=W=16 -> HW=256
    # (exercises the lane-dense tiled path: tHW=128, grid=(2, 2)).
    B, H, W, C = 2, 16, 16, 32
    key = jax.random.PRNGKey(0)
    x = jax.random.normal(key, (B, H * W, C), dtype=jnp.float32)

    out = patch_unembed(x, (H, W), embed_dim=C)
    out = jax.block_until_ready(out)

    ref = jnp.swapaxes(x, 1, 2).reshape(B, C, H, W)
    assert out.shape == (B, C, H, W)
    assert jnp.allclose(out, ref), "mismatch vs reference"

    # Small-HW path (full-extent block): H=W=8 -> HW=64.
    B2, H2, W2 = 2, 8, 8
    x2 = jax.random.normal(jax.random.PRNGKey(1), (B2, H2 * W2, C), dtype=jnp.float32)
    out2 = jax.block_until_ready(patch_unembed(x2, (H2, W2), embed_dim=C))
    ref2 = jnp.swapaxes(x2, 1, 2).reshape(B2, C, H2, W2)
    assert jnp.allclose(out2, ref2), "mismatch vs reference (small-HW path)"

    # Ragged path (HW not a multiple of tHW): H=W=12 -> HW=144, tHW=128, masked tail.
    B3, H3, W3 = 1, 12, 12
    x3 = jax.random.normal(jax.random.PRNGKey(2), (B3, H3 * W3, C), dtype=jnp.float32)
    out3 = jax.block_until_ready(patch_unembed(x3, (H3, W3), embed_dim=C))
    ref3 = jnp.swapaxes(x3, 1, 2).reshape(B3, C, H3, W3)
    assert jnp.allclose(out3, ref3), "mismatch vs reference (ragged path)"

    print("KERNEL_OK")
</pallas_src>

<mosaic_0001>
module attributes {stable_mosaic.version = 11 : i64} {
  func.func @_unembed_kernel(%arg0: i32, %arg1: i32, %arg2: memref<1x128x32xf32, #tpu.memory_space<vmem>>, %arg3: memref<1x32x128xf32, #tpu.memory_space<vmem>>) attributes {dimension_semantics = [#tpu.dimension_semantics<parallel>, #tpu.dimension_semantics<parallel>], iteration_bounds = array<i64: 2, 2>, scalar_prefetch = 0 : i64, scratch_operands = 0 : i64, tpu.core_type = #tpu.core_type<tc>, window_params = [{transform_indices = @transform_0, window_bounds = array<i64: 1, 128, 32>}, {transform_indices = @transform_1, window_bounds = array<i64: 1, 32, 128>}]} {
    %c0 = arith.constant 0 : index
    %c0_0 = arith.constant 0 : index
    %c0_1 = arith.constant 0 : index
    %0 = vector.load %arg2[%c0, %c0_0, %c0_1] : memref<1x128x32xf32, #tpu.memory_space<vmem>>, vector<1x128x32xf32>
    %1 = vector.shape_cast %0 : vector<1x128x32xf32> to vector<128x32xf32>
    %2 = tpu.transpose %1, [1, 0] : vector<128x32xf32> -> vector<32x128xf32>
    %c0_2 = arith.constant 0 : index
    %c0_3 = arith.constant 0 : index
    %c0_4 = arith.constant 0 : index
    %3 = vector.load %arg3[%c0_2, %c0_3, %c0_4] : memref<1x32x128xf32, #tpu.memory_space<vmem>>, vector<1x32x128xf32>
    %4 = vector.shape_cast %3 : vector<1x32x128xf32> to vector<32x128xf32>
    %5 = vector.shape_cast %2 : vector<32x128xf32> to vector<1x32x128xf32>
    tpu.vector_store %arg3[%c0_2, %c0_3, %c0_4], %5 {strides = array<i32>} : memref<1x32x128xf32, #tpu.memory_space<vmem>>, vector<1x32x128xf32>,
    return
  }
  func.func @transform_0(%arg0: i32, %arg1: i32) -> (i32, i32, i32) {
    %c0_i32 = arith.constant 0 : i32
    %c0_i32_0 = arith.constant 0 : i32
    return %arg0, %arg1, %c0_i32 : i32, i32, i32
  }
  func.func @transform_1(%arg0: i32, %arg1: i32) -> (i32, i32, i32) {
    %c0_i32 = arith.constant 0 : i32
    %c0_i32_0 = arith.constant 0 : i32
    return %arg0, %c0_i32, %arg1 : i32, i32, i32
  }
}

</mosaic_0001>

<bundles_post_ra>
// kernel: tpu_custom_call.1
= control target key start
LH: loop header
LB: loop body
LE: loop exit
PB: predicated region body
PF: predicated region fallthrough
CT: control target
= control target key end

     0   :  { %6 = vsyncpa [#allocation3], 0  ;;  %s631_s0 = inlined_call_operand.vmem [shape: f32[2,256,32], index: 0, kind: input, shape index: {}]   ;;  %s632_s1 = inlined_call_operand.hbm [shape: f32[2,32,256], index: 1, kind: output, shape index: {}]  }
   0x1   :  { %8 = vsyncpa [#allocation3 + $0x1], 0  ;;  %s492_s6 = smov 0   ;;  %s494_s7 = smov 0  }
   0x2   :  { %s496_s8 = smov 0   ;;  %s498_s9 = smov 0  }
   0x3   :  { %s500_s10 = smov 0   ;;  %s502_s11 = smov 0  }
   0x4   :  { %s504_s12 = smov 0   ;;  %s506_s13 = smov 0  }
   0x5 LB: > { %s295_s14 = sadd.s32 4294967295, %s477_s13   ;;  %s296_s15 = sadd.s32 4294967294, %s477_s13   ;;  %s477_s13 = sphi %s506_s13, %s14_s13   ;;  %s473_s12 = sphi %s504_s12, %s641_s12   ;;  %s469_s11 = sphi %s502_s11, %s640_s11   ;;  %s465_s10 = sphi %s500_s10, %s639_s10   ;;  %s461_s9 = sphi %s498_s9, %s638_s9   ;;  %s457_s8 = sphi %s496_s8, %s637_s8   ;;  %s453_s7 = sphi %s494_s7, %s636_s7   ;;  %s449_s6 = sphi %s492_s6, %s635_s6  }
   0x6   : > { %s23_s16 = sadd.s32 1, %s469_s11  ;;  %s26_s17 = sadd.s32 1, %s473_s12 }
   0x7   : > { %p24_p0 = scmp.ge.s32.totalorder %s23_s16, 2  ;;  %p73_p1 = scmp.ne.s32.totalorder %s457_s8, %s453_s7 }
   0x8   : > { %p74_p2 = scmp.eq.s32.totalorder %s295_s14, 3  ;;  %p79_p5 = scmp.ne.s32.totalorder %s453_s7, %s449_s6 }
   0x9   : > { %s643_s16 = smov (%p24_p0, %s23_s16), 0  ;;  %s645_s17 = smov (!%p24_p0, %s26_s17), %s473_s12 }
   0xa   : > { %s59_s18 = ssub.s32 %s469_s11, %s643_s16  ;;  %p543_p3 = por %p74_p2, %p73_p1 }
   0xb   : > { %p28_p4 = scmp.ge.s32.totalorder %s645_s17, 2  ;;  %p80_p6 = scmp.eq.s32.totalorder %s296_s15, 3 }
   0xc   : > { %p299_p7 = scmp.ge.s32.totalorder %s477_s13, 1  ;;  %p111_p9 = scmp.lt.s32.totalorder %s477_s13, 5 }
   0xd   : > { %s647_s17 = smov (%p28_p4, %s645_s17), 0  ;;  %p552_p8 = por %p80_p6, %p79_p5 }
   0xe   : > { %s58_s21 = ssub.s32 %s473_s12, %s647_s17  ;;  %s63_s22 = sadd.s32 1, %s457_s8 }
   0xf   : > { %s60_s23 = sor.u32 %s59_s18, %s58_s21  ;;  %p112_p10 = pnand %p299_p7, %p111_p9 }
  0x10   : > { %p61_p11 = scmp.eq.s32.totalorder %s60_s23, 0  ;;  %s301_s25 = sshll.u32 (!%p112_p10), %s461_s9, 4 }
  0x11   : > { %115 = sbr.rel (%p112_p10) target bundleno = 223 (0xdf), region = 24  ;;  %p136_p12 = scmp.lt.s32.totalorder (!%p112_p10), %s465_s10, 1 }
  0x12   : > { %s561_s24 = scalar_select %p61_p11, %s457_s8, %s63_s22  }
  0x13   : > { %p138_p13 = scmp.lt.s32.totalorder (!%p112_p10), %s301_s25, 31  ;;  %s132_s4 = sand.u32 (!%p112_p10), 1, %s453_s7  }
  0x14   : > { %s300_s5 = sshll.u32 (!%p112_p10), %s132_s4, 5  ;;  %s305_s15 = sshll.u32 (!%p112_p10), %s465_s10, 3 }
  0x15   : > { %s134_s14 = scalar_lea.vmem (!%p112_p10), [#allocation2], %s300_s5  ;;  %s208_s18 = sadd.s32 (!%p112_p10), %s461_s9, %s305_s15 }
  0x16   : > { %s137_s26 = scalar_select %p136_p12, %s465_s10, 1 }
  0x17   : > { %s649_s25 = smov (!%p138_p13, %s301_s25), 31  ;;  %s306_s21 = sshll.u32 %s208_s18, 3 }
  0x18   : > { %s302_s27 = sshll.u32 %s137_s26, 5  ;;  %s211_s26 = sshll.u32 %s134_s14, 4  ;;  %s212_s26 = int_to_ptr.vmem [resolvable:$true] %s211_s26 }
  0x19   : > { %s141_s28 = sadd.s32 %s302_s27, %s649_s25  ;;  %s210_s25 = scalar_lea.hbm %s632_s1, %s306_s21 }
  0x1a   : > { %s303_s29 = sshll.u32 %s141_s28, 3  ;;  %s213_s27 = sshll.u32 %s210_s25, 4  ;;  %s214_s27 = int_to_ptr.hbm [resolvable:$true] %s213_s27 }
  0x1b   : > { %s569_s3 = scalar_lea.vmem %s631_s0, %s303_s29  ;;  %s198_s28 = scalar_lea.sflag [#allocation3], %s132_s4 }
  0x1c   : > { %v145_v0 = vld [vmem:[%s569_s3] sm:$0xff]  ;;  %v146_v1 = vld [vmem:[%s569_s3 + $0x8] sm:$0xff]  ;;  %v147_v2 = vld [vmem:[%s569_s3 + $0x10] sm:$0xff]  ;;  %s397_s29 = sshra.s32 %s214_s27, 4  ;;  %s403_s2 = scalar_lea.hbm %s632_s1, 128  ;;  %s398_s29 = int_to_ptr.hbm [resolvable:$true] %s397_s29 }
  0x1d   : > { %161 = vxpose.xlu0.b32.start [1/16] (narrow) %v145_v0, 32  ;;  %v148_v3 = vld [vmem:[%s569_s3 + $0x18] sm:$0xff]  ;;  %v149_v4 = vld [vmem:[%s569_s3 + $0x20] sm:$0xff]  ;;  %v150_v5 = vld [vmem:[%s569_s3 + $0x28] sm:$0xff]  ;;  %s399_s10 = scalar_lea.hbm %s398_s29, 32  ;;  %p404_p4 = scmp.lt.s32.totalorder %s398_s29, %s632_s1 }
  0x1e   : > { %v151_v6 = vld [vmem:[%s569_s3 + $0x30] sm:$0xff]  ;;  %v152_v7 = vld [vmem:[%s569_s3 + $0x38] sm:$0xff]  ;;  %v153_v8 = vld [vmem:[%s569_s3 + $0x40] sm:$0xff]  ;;  %p400_p0 = scmp.ne.s32.totalorder %s398_s29, %s399_s10  ;;  %p405_p5 = scmp.lt.s32.totalorder %s403_s2, %s399_s10 }
  0x1f   : > { %v154_v9 = vld [vmem:[%s569_s3 + $0x48] sm:$0xff]  ;;  %v155_v10 = vld [vmem:[%s569_s3 + $0x50] sm:$0xff]  ;;  %v156_v11 = vld [vmem:[%s569_s3 + $0x58] sm:$0xff] }
  0x20   : > { %v157_v12 = vld [vmem:[%s569_s3 + $0x60] sm:$0xff]  ;;  %v158_v13 = vld [vmem:[%s569_s3 + $0x68] sm:$0xff]  ;;  %v159_v14 = vld [vmem:[%s569_s3 + $0x70] sm:$0xff]  ;;  %p401_p1 = pnand %p400_p0, %p543_p3  ;;  %p406_p6 = por %p405_p5, %p404_p4 }
  0x21   : > { %v160_v15 = vld [vmem:[%s569_s3 + $0x78] sm:$0xff] }
  0x22   : > { %p402_p2 = pneg %p401_p1 }
  0x24   : > { %p407_p7 = pnand %p406_p6, %p402_p2 }
  0x25   : > { %162 = vxpose.xlu0.b32.cont [2/16] (narrow) %v146_v1, 32 }
  0x2d   : > { %163 = vxpose.xlu0.b32.cont [3/16] (narrow) %v147_v2, 32 }
  0x35   : > { %164 = vxpose.xlu0.b32.cont [4/16] (narrow) %v148_v3, 32 }
  0x3d   : > { %165 = vxpose.xlu0.b32.cont [5/16] (narrow) %v149_v4, 32 }
  0x45   : > { %166 = vxpose.xlu0.b32.cont [6/16] (narrow) %v150_v5, 32 }
  0x4d   : > { %167 = vxpose.xlu0.b32.cont [7/16] (narrow) %v151_v6, 32 }
  0x55   : > { %168 = vxpose.xlu0.b32.cont [8/16] (narrow) %v152_v7, 32 }
  0x5d   : > { %169 = vxpose.xlu0.b32.cont [9/16] (narrow) %v153_v8, 32 }
  0x65   : > { %170 = vxpose.xlu0.b32.cont [10/16] (narrow) %v154_v9, 32 }
  0x6d   : > { %171 = vxpose.xlu0.b32.cont [11/16] (narrow) %v155_v10, 32 }
  0x75   : > { %172 = vxpose.xlu0.b32.cont [12/16] (narrow) %v156_v11, 32 }
  0x7d   : > { %173 = vxpose.xlu0.b32.cont [13/16] (narrow) %v157_v12, 32 }
  0x85   : > { %174 = vxpose.xlu0.b32.cont [14/16] (narrow) %v158_v13, 32 }
  0x8d   : > { %175 = vxpose.xlu0.b32.cont [15/16] (narrow) %v159_v14, 32 }
  0x95   : > { %176 = vxpose.xlu0.b32.end [16/16] (narrow) %v160_v15, 32 }
  0xc1   : > { %v177_v16 = vpop.trf.xlu0 }
  0xc2   : > { %193 = vst [vmem:[%s134_s14] sm:$0xff] %v177_v16 }
  0xc9   : > { %v178_v17 = vpop.trf.xlu0 }
  0xca   : > { %194 = vst [vmem:[%s134_s14 + $0x8] sm:$0xff] %v178_v17 }
  0xd1   : > { %v179_v18 = vpop.trf.xlu0 }
  0xd2   : > { %195 = vst [vmem:[%s134_s14 + $0x10] sm:$0xff] %v179_v18 }
  0xd9   : > { %v180_v19 = vpop.trf.xlu0 }
  0xda   : > { %196 = vst [vmem:[%s134_s14 + $0x18] sm:$0xff] %v180_v19 }
  0xdb   : > { %410 = shalt.err (!%p407_p7)
}
  0xdc   : > { %s479_s4 = smov 128   ;;  %s480_s14 = smov 256  }
  0xdd   : > { %s481_s15 = smov 8  }
  0xde   : > { %309 = dma.vmem_to_hbm [thread:$0]  (%p543_p3), %s212_s26, 512, %s214_s27, %s198_s28, %s479_s4, %s480_s14, %s481_s15  }
  0xdf PF: > { %p315_p9 = scmp.ge.s32.totalorder %s477_s13, 2  ;;  %s228_s18 = sand.u32 1, %s449_s6  }
  0xe0   : > { %s229_s21 = scalar_lea.sflag [#allocation3], %s228_s18 }
  0xe1   : > { %p312_p10 = pnand %p315_p9, %p552_p8 }
  0xe3   : > { %p313_p11 = pneg %p312_p10 }
  0xe5   : > { %444 = dma.done.wait (%p313_p11), %s229_s21, 512  }
  0xe6   : > { %446 = vsyncadd (%p313_p11), %s229_s21, 4294966784  ;;  %s14_s13 = sadd.s32 1, %s477_s13   ;;  %s635_s6 = smov %s453_s7 }
  0xe7   : > { %p11_p12 = scmp.ge.s32.totalorder %s14_s13, 6   ;;  %s636_s7 = smov %s457_s8 }
  0xe8   : > { %s637_s8 = smov %s561_s24  ;;  %s638_s9 = smov %s469_s11 }
  0xe9   : > { %s639_s10 = smov %s473_s12  ;;  %s640_s11 = smov %s643_s16 }
  0xea   : > { %s641_s12 = smov %s647_s17  ;;  %13 = sbr.rel (!%p11_p12) target bundleno = 5 (0x5), region = 59 }
  0xef   :  { %235 = vsyncpa [#allocation3], 1 }
  0xf0   :  { %237 = vsyncpa [#allocation3 + $0x1], 1 }

</bundles_post_ra>
